<compile_context>
chip_gen: v5e
topology: v5e:2x2
jax: 0.10.0
libtpu: 0.0.40
codegen_flags: <defaults>
</compile_context>

<pallas_src>
import functools

import jax
import jax.numpy as jnp
from jax import lax
from jax.experimental import pallas as pl
from jax.experimental.pallas import tpu as pltpu


def _cdiv(a: int, b: int) -> int:
    return -(-a // b)


def _round_up(x: int, m: int) -> int:
    return ((x + m - 1) // m) * m


def _default_tile_budget() -> int:
    """~8 MiB x-tiles on v6e/v7x, ~6 MiB on v5e (best-effort device sniff)."""
    try:
        kind = jax.devices()[0].device_kind.lower()
    except Exception:  # pragma: no cover - defensive
        kind = ""
    if "v5 lite" in kind or "v5e" in kind or "v5litepod" in kind:
        return 6 * 1024 * 1024
    return 8 * 1024 * 1024


def _choose_tiles(B: int, S: int, H: int, itemsize: int, budget: int):
    """Pick (TB, TS, TH). TS is a multiple of 128 or == S; TH a multiple of 128 or == H."""
    TB = B if B <= 32 else 32

    def fit_ts(th: int) -> int:
        # Bytes per sequence row in the tile: x row + sublane-padded f32 mask
        # row (a (8,1) f32 mask tile occupies a full 4 KiB VMEM tile -> 512 B/row).
        row_bytes = TB * (th * itemsize + 512)
        ts_max = max(1, budget // row_bytes)
        if ts_max >= S or S <= 128:
            return S
        return max(128, (ts_max // 128) * 128)

    TH = H
    TS = fit_ts(TH)
    # If even a 128-row sequence tile at full hidden width blows the budget,
    # tile the hidden axis too (floor 512 so HBM DMA runs stay long).
    if TB * TS * TH * itemsize > budget and H > 512:
        TH = 512
        TS = fit_ts(TH)

    # Guarantee >= 2 blocks on the parallel (batch x hidden) axes so the work
    # can shard across TensorCores (v7x megacore).  Re-fit TS so the tile size
    # (and hence per-step overhead) stays roughly unchanged.
    if _cdiv(B, TB) * _cdiv(H, TH) < 2 and H >= 256:
        TH = _round_up(_cdiv(H, 2), 128)
        TS = fit_ts(TH)

    return TB, TS, TH


def _mean_pool_kernel(x_ref, m_ref, o_ref, emb_acc, msk_acc, *, seq_len, seq_tile):
    # x_ref:    (TB, TS, TH)  native dtype (f32 / bf16)
    # m_ref:    (TB, TS, 1)   f32 mask (broadcasts over the hidden/lane axis)
    # o_ref:    (TB, TH)      output dtype
    # emb_acc:  (TB, TH)      f32 VMEM scratch (sum of masked embeddings)
    # msk_acc:  (TB, 1)       f32 VMEM scratch (sum of mask / token count)
    s = pl.program_id(2)

    @pl.when(s == 0)
    def _():
        emb_acc[...] = jnp.zeros_like(emb_acc)
        msk_acc[...] = jnp.zeros_like(msk_acc)

    x = x_ref[...].astype(jnp.float32)   # (TB, TS, TH) -> f32 (torch promotes too)
    m = m_ref[...]                       # (TB, TS, 1)  f32

    if seq_len % seq_tile != 0:
        # Last S block is partial: out-of-bounds rows of x/m in VMEM are
        # undefined, so use a select (never rely on garbage * 0).
        row = lax.broadcasted_iota(jnp.int32, (1, seq_tile, 1), 1)
        valid = (s * seq_tile + row) < seq_len
        xm = jnp.where(valid, x * m, 0.0)
        m = jnp.where(valid, m, 0.0)
    else:
        xm = x * m

    emb_acc[...] += jnp.sum(xm, axis=1)   # (TB, TH) f32
    msk_acc[...] += jnp.sum(m, axis=1)    # (TB, 1)  f32

    @pl.when(s == pl.num_programs(2) - 1)
    def _():
        denom = jnp.maximum(msk_acc[...], 1e-9)   # torch.clamp(min=1e-9)
        o_ref[...] = (emb_acc[...] / denom).astype(o_ref.dtype)


def mean_pooling(last_hidden_state: jax.Array,
                 attention_mask: jax.Array,
                 *,
                 out_dtype=jnp.float32,
                 x_tile_budget_bytes: int | None = None) -> jax.Array:
    """Masked mean pooling over the sequence axis (MeanPooling.forward)."""
    B, S, H = last_hidden_state.shape
    assert attention_mask.shape == (B, S)

    if x_tile_budget_bytes is None:
        x_tile_budget_bytes = _default_tile_budget()

    x = last_hidden_state
    itemsize = jnp.dtype(x.dtype).itemsize
    TB, TS, TH = _choose_tiles(B, S, H, itemsize, x_tile_budget_bytes)

    # Mask: cast once to f32 (torch `.float()`), shaped (B, S, 1) so it is
    # already in the layout that broadcasts over the hidden/lane axis in-kernel.
    m = attention_mask.astype(jnp.float32)[:, :, None]

    grid = (_cdiv(B, TB), _cdiv(H, TH), _cdiv(S, TS))

    kernel = functools.partial(_mean_pool_kernel, seq_len=S, seq_tile=TS)

    out = pl.pallas_call(
        kernel,
        out_shape=jax.ShapeDtypeStruct((B, H), out_dtype),
        grid_spec=pltpu.PrefetchScalarGridSpec(
            num_scalar_prefetch=0,
            grid=grid,
            in_specs=[
                pl.BlockSpec((TB, TS, TH), lambda b, h, s: (b, s, h)),
                pl.BlockSpec((TB, TS, 1), lambda b, h, s: (b, s, 0)),
            ],
            out_specs=pl.BlockSpec((TB, TH), lambda b, h, s: (b, h)),
            scratch_shapes=[
                pltpu.VMEM((TB, TH), jnp.float32),   # sum of masked embeddings
                pltpu.VMEM((TB, 1), jnp.float32),    # sum of mask (token counts)
            ],
        ),
        compiler_params=pltpu.CompilerParams(
            dimension_semantics=("parallel", "parallel", "arbitrary"),
            vmem_limit_bytes=32 * 1024 * 1024,
        ),
    )(x, m)
    return out


def _mean_pooling_ref(x, mask):
    """Pure-JAX reference with identical semantics to the PyTorch module."""
    m = mask.astype(jnp.float32)[:, :, None]
    x32 = x.astype(jnp.float32)
    s = jnp.sum(x32 * m, axis=1)
    d = jnp.maximum(jnp.sum(m, axis=1), 1e-9)
    return s / d


if __name__ == "__main__":
    key = jax.random.PRNGKey(0)
    k1, k2, k3, k4 = jax.random.split(key, 4)

    # --- Test 1: small f32 case (module-demo shapes), single-block path. ---
    B, S, H = 2, 8, 32
    x = jax.random.normal(k1, (B, S, H), dtype=jnp.float32)
    mask = (jax.random.uniform(k2, (B, S)) > 0.3).astype(jnp.int32)
    out = mean_pooling(x, mask)
    jax.block_until_ready(out)
    ref = _mean_pooling_ref(x, mask)
    assert out.shape == (B, H)
    assert jnp.allclose(out, ref, atol=1e-4, rtol=1e-4)

    # --- Test 2: non-divisible S (partial S block + in-kernel validity mask),
    #     hidden split into 2 parallel blocks with a partial H tail, multi-step
    #     accumulation, and the fully-masked-row clamp path.  Tiny tile budget
    #     forces the tiled grid even at small shapes. ---
    B2, S2, H2 = 3, 200, 300
    x2 = jax.random.normal(k3, (B2, S2, H2), dtype=jnp.float32)
    mask2 = (jax.random.uniform(k4, (B2, S2)) > 0.5).astype(jnp.int32)
    mask2 = mask2.at[1].set(0)  # all-zero mask row -> clamp(min=1e-9) path
    out2 = mean_pooling(x2, mask2, x_tile_budget_bytes=256 * 1024)
    jax.block_until_ready(out2)
    ref2 = _mean_pooling_ref(x2, mask2)
    assert out2.shape == (B2, H2)
    assert jnp.allclose(out2, ref2, atol=1e-4, rtol=1e-4)

    # --- Test 3: bf16 activations (f32 accumulation inside the kernel). ---
    x3 = x.astype(jnp.bfloat16)
    out3 = mean_pooling(x3, mask)
    jax.block_until_ready(out3)
    ref3 = _mean_pooling_ref(x3, mask)
    assert jnp.allclose(out3, ref3, atol=1e-2, rtol=1e-2)

    print("KERNEL_OK")
</pallas_src>

<mosaic_0001>
module attributes {stable_mosaic.version = 11 : i64} {
  func.func @_mean_pool_kernel(%arg0: i32, %arg1: i32, %arg2: i32, %arg3: memref<2x8x32xf32, #tpu.memory_space<vmem>>, %arg4: memref<2x8x1xf32, #tpu.memory_space<vmem>>, %arg5: memref<2x32xf32, #tpu.memory_space<vmem>>, %arg6: memref<2x32xf32, #tpu.memory_space<vmem>>, %arg7: memref<2x1xf32, #tpu.memory_space<vmem>>) attributes {dimension_semantics = [#tpu.dimension_semantics<parallel>, #tpu.dimension_semantics<parallel>, #tpu.dimension_semantics<arbitrary>], iteration_bounds = array<i64: 1, 1, 1>, scalar_prefetch = 0 : i64, scratch_operands = 2 : i64, tpu.core_type = #tpu.core_type<tc>, window_params = [{transform_indices = @transform_0, window_bounds = array<i64: 2, 8, 32>}, {transform_indices = @transform_1, window_bounds = array<i64: 2, 8, 1>}, {transform_indices = @transform_2, window_bounds = array<i64: 2, 32>}]} {
    %c0_i32 = arith.constant 0 : i32
    %0 = arith.cmpi eq, %arg2, %c0_i32 : i32
    %1 = arith.extui %0 : i1 to i32
    %c0_i32_0 = arith.constant 0 : i32
    %2 = arith.cmpi ne, %1, %c0_i32_0 : i32
    scf.if %2 {
      %cst_17 = arith.constant 0.000000e+00 : f32
      %18 = vector.broadcast %cst_17 : f32 to vector<2x32xf32>
      %c0_18 = arith.constant 0 : index
      %c0_19 = arith.constant 0 : index
      %19 = vector.load %arg6[%c0_18, %c0_19] : memref<2x32xf32, #tpu.memory_space<vmem>>, vector<2x32xf32>
      tpu.vector_store %arg6[%c0_18, %c0_19], %18 {strides = array<i32>} : memref<2x32xf32, #tpu.memory_space<vmem>>, vector<2x32xf32>,
      %cst_20 = arith.constant 0.000000e+00 : f32
      %20 = vector.broadcast %cst_20 : f32 to vector<2x1xf32>
      %c0_21 = arith.constant 0 : index
      %c0_22 = arith.constant 0 : index
      %21 = vector.load %arg7[%c0_21, %c0_22] : memref<2x1xf32, #tpu.memory_space<vmem>>, vector<2x1xf32>
      tpu.vector_store %arg7[%c0_21, %c0_22], %20 {strides = array<i32>} : memref<2x1xf32, #tpu.memory_space<vmem>>, vector<2x1xf32>,
    } else {
    }
    %c0 = arith.constant 0 : index
    %c0_1 = arith.constant 0 : index
    %c0_2 = arith.constant 0 : index
    %3 = vector.load %arg3[%c0, %c0_1, %c0_2] : memref<2x8x32xf32, #tpu.memory_space<vmem>>, vector<2x8x32xf32>
    %c0_3 = arith.constant 0 : index
    %c0_4 = arith.constant 0 : index
    %c0_5 = arith.constant 0 : index
    %4 = vector.load %arg4[%c0_3, %c0_4, %c0_5] : memref<2x8x1xf32, #tpu.memory_space<vmem>>, vector<2x8x1xf32>
    %5 = vector.broadcast %4 : vector<2x8x1xf32> to vector<2x8x32xf32>
    %6 = arith.mulf %3, %5 : vector<2x8x32xf32>
    %c0_6 = arith.constant 0 : index
    %c0_7 = arith.constant 0 : index
    %7 = vector.load %arg6[%c0_6, %c0_7] : memref<2x32xf32, #tpu.memory_space<vmem>>, vector<2x32xf32>
    %cst = arith.constant dense<0.000000e+00> : vector<2x32xf32>
    %8 = vector.multi_reduction <add>, %6, %cst [1] : vector<2x8x32xf32> to vector<2x32xf32>
    %9 = arith.addf %7, %8 : vector<2x32xf32>
    %c0_8 = arith.constant 0 : index
    %c0_9 = arith.constant 0 : index
    %10 = vector.load %arg6[%c0_8, %c0_9] : memref<2x32xf32, #tpu.memory_space<vmem>>, vector<2x32xf32>
    tpu.vector_store %arg6[%c0_8, %c0_9], %9 {strides = array<i32>} : memref<2x32xf32, #tpu.memory_space<vmem>>, vector<2x32xf32>,
    %c0_10 = arith.constant 0 : index
    %c0_11 = arith.constant 0 : index
    %11 = vector.load %arg7[%c0_10, %c0_11] : memref<2x1xf32, #tpu.memory_space<vmem>>, vector<2x1xf32>
    %cst_12 = arith.constant dense<0.000000e+00> : vector<2x1xf32>
    %12 = vector.multi_reduction <add>, %4, %cst_12 [1] : vector<2x8x1xf32> to vector<2x1xf32>
    %13 = arith.addf %11, %12 : vector<2x1xf32>
    %c0_13 = arith.constant 0 : index
    %c0_14 = arith.constant 0 : index
    %14 = vector.load %arg7[%c0_13, %c0_14] : memref<2x1xf32, #tpu.memory_space<vmem>>, vector<2x1xf32>
    tpu.vector_store %arg7[%c0_13, %c0_14], %13 {strides = array<i32>} : memref<2x1xf32, #tpu.memory_space<vmem>>, vector<2x1xf32>,
    %c0_i32_15 = arith.constant 0 : i32
    %15 = arith.cmpi eq, %arg2, %c0_i32_15 : i32
    %16 = arith.extui %15 : i1 to i32
    %c0_i32_16 = arith.constant 0 : i32
    %17 = arith.cmpi ne, %16, %c0_i32_16 : i32
    scf.if %17 {
      %c0_17 = arith.constant 0 : index
      %c0_18 = arith.constant 0 : index
      %18 = vector.load %arg7[%c0_17, %c0_18] : memref<2x1xf32, #tpu.memory_space<vmem>>, vector<2x1xf32>
      %cst_19 = arith.constant 9.99999971E-10 : f32
      %19 = vector.broadcast %cst_19 : f32 to vector<2x1xf32>
      %20 = arith.maximumf %18, %19 : vector<2x1xf32>
      %c0_20 = arith.constant 0 : index
      %c0_21 = arith.constant 0 : index
      %21 = vector.load %arg6[%c0_20, %c0_21] : memref<2x32xf32, #tpu.memory_space<vmem>>, vector<2x32xf32>
      %22 = vector.broadcast %20 : vector<2x1xf32> to vector<2x32xf32>
      %23 = arith.divf %21, %22 : vector<2x32xf32>
      %c0_22 = arith.constant 0 : index
      %c0_23 = arith.constant 0 : index
      %24 = vector.load %arg5[%c0_22, %c0_23] : memref<2x32xf32, #tpu.memory_space<vmem>>, vector<2x32xf32>
      tpu.vector_store %arg5[%c0_22, %c0_23], %23 {strides = array<i32>} : memref<2x32xf32, #tpu.memory_space<vmem>>, vector<2x32xf32>,
    } else {
    }
    return
  }
  func.func @transform_0(%arg0: i32, %arg1: i32, %arg2: i32) -> (i32, i32, i32) {
    %c0_i32 = arith.constant 0 : i32
    return %arg0, %arg2, %arg1 : i32, i32, i32
  }
  func.func @transform_1(%arg0: i32, %arg1: i32, %arg2: i32) -> (i32, i32, i32) {
    %c0_i32 = arith.constant 0 : i32
    %c0_i32_0 = arith.constant 0 : i32
    return %arg0, %arg2, %c0_i32 : i32, i32, i32
  }
  func.func @transform_2(%arg0: i32, %arg1: i32, %arg2: i32) -> (i32, i32) {
    %c0_i32 = arith.constant 0 : i32
    return %arg0, %arg1 : i32, i32
  }
}

</mosaic_0001>

<bundles_post_ra>
// kernel: tpu_custom_call.1
= control target key start
LH: loop header
LB: loop body
LE: loop exit
PB: predicated region body
PF: predicated region fallthrough
CT: control target
= control target key end

     0   :  { %vm61_vm0 = vcmask 7168   ;;  %v159_v2 = vmov 0   ;;  %vm18_vm1 = vcmask 1024   ;;  %s199_s0 = inlined_call_operand.vmem [shape: f32[2,8,32], index: 0, kind: input, shape index: {}]   ;;  %s200_s1 = inlined_call_operand.vmem [shape: f32[2,8,1], index: 1, kind: input, shape index: {}]   ;;  %s201_s2 = inlined_call_operand.hbm [shape: f32[2,32], index: 2, kind: output, shape index: {}]  }
   0x1   :  { %v22_v0 = vld [vmem:[%s200_s1] sm:$0xff]  ;;  %v23_v1 = vld [vmem:[%s200_s1 + $0x8] sm:$0xff]  ;;  %129 = vset.pattern.permute.xlu0 %v159_v2  ;;  %130 = vset.pattern.permute.xlu1 %v159_v2 }
   0x2   :  { %v62_v3 = vsel %vm61_vm0, %v22_v0, 0.0  ;;  %v69_v4 = vsel %vm61_vm0, %v23_v1, 0.0 }
   0x3   :  { %7 = vsyncpa [#allocation5], 0  ;;  %26 = vperm.xlu0 %129, %v22_v0   ;;  %v63_v5 = vrot.slane %v62_v3, 4  ;;  %v70_v6 = vrot.slane %v69_v4, 4  ;;  %v160_v7 = vmov 0.0   ;;  %vm54_vm2 = vcmask 1041409  }
   0x4   :  { %19 = vst.msk [vmem:[#allocation3] sm:$0x3] %vm18_vm1, %v160_v7  ;;  %vm16_vm3 = vcmask 254976   ;;  %v20_v23 = vld [vmem:[%s199_s0] sm:$0xff]  ;;  %vm37_vm4 = vcmask 261120   ;;  %v21_v29 = vld [vmem:[%s199_s0 + $0x8] sm:$0xff] }
   0x5   :  { %v64_v8 = vadd.f32 %v63_v5, %v62_v3  ;;  %v71_v9 = vadd.f32 %v70_v6, %v69_v4  ;;  %17 = vst.msk [vmem:[#allocation2] sm:$0x3] %vm16_vm3, %v160_v7  ;;  %s161_s0 = smov [#allocation4]   ;;  %s117_s19 = sshll.u32 %s201_s2, 4  ;;  %s118_s19 = int_to_ptr.hbm [resolvable:$true] %s117_s19 }
   0x6   :  { %s115_s16 = sshll.u32 %s161_s0, 4  ;;  %s116_s16 = int_to_ptr.vmem [resolvable:$true] %s115_s16 }
   0x7   :  { %v65_v10 = vrot.slane %v64_v8, 2  ;;  %v72_v11 = vrot.slane %v71_v9, 2 }
   0x9   :  { %v66_v12 = vadd.f32 %v65_v10, %v64_v8  ;;  %v73_v13 = vadd.f32 %v72_v11, %v71_v9 }
   0xb   :  { %v67_v14 = vrot.slane %v66_v12, 1  ;;  %v74_v15 = vrot.slane %v73_v13, 1  ;;  %31 = vperm.xlu0 %129, %v23_v1   ;;  %v60_v18 = vld [vmem:[#allocation3] sm:$0x3] }
   0xc   :  { %v36_v43 = vld [vmem:[#allocation2] sm:$0x3] }
   0xd   :  { %v68_v16 = vadd.f32 %v67_v14, %v66_v12  ;;  %v75_v17 = vadd.f32 %v74_v15, %v73_v13 }
   0xf   :  { %v78_v19 = vsel %vm54_vm2, %v75_v17, %v68_v16 }
  0x10   :  { %v80_v20 = vadd.f32 %v78_v19, %v60_v18 }
  0x12   :  { %82 = vst.msk [vmem:[#allocation3] sm:$0x3] %vm18_vm1, %v80_v20 }
  0x19   :  { %v86_v21 = vld [vmem:[#allocation3] sm:$0x3] }
  0x1a   :  { %v87_v22 = vmax.f32 %v86_v21, 1e-09 }
  0x1c   :  { %91 = vperm.xlu1 %130, %v87_v22  }
  0x75   :  { %v27_v24 = vpop.permute.xlu0 %26 }
  0x76   :  { %v34_v25 = vmul.f32 %v27_v24, %v20_v23 }
  0x78   :  { %v38_v26 = vsel %vm37_vm4, %v34_v25, 0.0 }
  0x79   :  { %v39_v27 = vrot.slane %v38_v26, 4 }
  0x7b   :  { %v40_v28 = vadd.f32 %v39_v27, %v38_v26 }
  0x7d   :  { %v32_v30 = vpop.permute.xlu0 %31  ;;  %v41_v32 = vrot.slane %v40_v28, 2 }
  0x7e   :  { %v35_v31 = vmul.f32 %v32_v30, %v21_v29 }
  0x7f   :  { %v42_v35 = vadd.f32 %v41_v32, %v40_v28 }
  0x80   :  { %v45_v33 = vsel %vm37_vm4, %v35_v31, 0.0 }
  0x81   :  { %v46_v34 = vrot.slane %v45_v33, 4  ;;  %v43_v38 = vrot.slane %v42_v35, 1 }
  0x83   :  { %v47_v36 = vadd.f32 %v46_v34, %v45_v33  ;;  %v44_v41 = vadd.f32 %v43_v38, %v42_v35 }
  0x85   :  { %v48_v37 = vrot.slane %v47_v36, 2 }
  0x87   :  { %v49_v39 = vadd.f32 %v48_v37, %v47_v36 }
  0x89   :  { %v50_v40 = vrot.slane %v49_v39, 1 }
  0x8b   :  { %v51_v42 = vadd.f32 %v50_v40, %v49_v39 }
  0x8d   :  { %v55_v44 = vsel %vm54_vm2, %v51_v42, %v44_v41 }
  0x8e   :  { %v92_v45 = vpop.permute.xlu1 %91  ;;  %v57_v46 = vadd.f32 %v55_v44, %v36_v43 }
  0x8f   :  { %131 = vrcp.f32 %v92_v45  ;;  %v105_v50 = vand.u32 2147483648, %v92_v45  ;;  %v103_v52 = vand.u32 2147483647, %v92_v45  ;;  %vm99_vm6 = vweird.f32 %v92_v45 }
  0x90   :  { %59 = vst.msk [vmem:[#allocation2] sm:$0x3] %vm16_vm3, %v57_v46 }
  0x91   :  { %v106_v54 = vor.u32 1.1754944e-38, %v105_v50  ;;  %vm104_vm8 = vcmp.eq.f32.partialorder %v103_v52, 8.507059e+37 }
  0x95   :  { %v132_v47 = vpop.eup %131 }
  0x96   :  { %v95_v48 = vmul.f32 %v132_v47, %v92_v45  ;;  %vm100_vm5 = vweird.f32 %v132_v47 }
  0x97   :  { %vm101_vm7 = vmor %vm99_vm6, %vm100_vm5  ;;  %v88_v56 = vld [vmem:[#allocation2] sm:$0x3] }
  0x98   :  { %v96_v49 = vsub.f32 1.0, %v95_v48 }
  0x9a   :  { %v97_v51 = vmul.f32 %v132_v47, %v96_v49 }
  0x9c   :  { %v98_v53 = vadd.f32 %v132_v47, %v97_v51 }
  0x9e   :  { %v102_v55 = vsel %vm101_vm7, %v132_v47, %v98_v53 }
  0x9f   :  { %v107_v57 = vsel %vm104_vm8, %v106_v54, %v102_v55 }
  0xa0   :  { %v108_v58 = vmul.f32 %v107_v57, %v88_v56 }
  0xa2   :  { %109 = vst.msk [vmem:[#allocation4] sm:$0x3] %vm16_vm3, %v108_v58 }
  0xa3   :  { %120 = dma.vmem_to_hbm [thread:$0]  %s116_s16, 32, %s118_s19, [#allocation5]  }
  0xa4   :  { %157 = dma.done.wait [#allocation5], 32  }
  0xa5   :  { %158 = vsyncadd [#allocation5], 4294967264 }
  0xa6   :  { %125 = vsyncpa [#allocation5], 1 }

</bundles_post_ra>
